<compile_context>
chip_gen: v7x
topology: tpu7x:2x2x1
jax: 0.10.0
libtpu: 0.0.40
codegen_flags: <defaults>
</compile_context>

<pallas_src>
import functools
import numpy as np
import jax
import jax.numpy as jnp
from jax.experimental import pallas as pl
from jax.experimental.pallas import tpu as pltpu

# ---------------- small RetNet-style config ----------------
B, T = 2, 16
D = 64           # decoder_embed_dim
DV = 64          # decoder_value_embed_dim
H = 2            # decoder_retention_heads
K = D // H       # key dim per head
DH = DV // H     # value head dim
F = 128          # decoder_ffn_embed_dim
EPS = 1e-5       # layernorm_eps
SCALING = K ** -0.5   # folded into the fused projection weight

# TODO(synk): dropout / DropPath are identity here (p=0 / eval); MoE branch not taken.
# TODO(synk): with D=64 every activation vreg is half-lane; if T ever grows, present
#             the in/out slab as a contiguous (B*T/2, 128) reshape for unmasked vst.


def _rms(x, eps):
    return x * jax.lax.rsqrt(jnp.mean(x * x, axis=-1, keepdims=True) + eps)


# ---------------- fused decoder-layer kernel ----------------
def decoder_layer_kernel(x_ref, wqkvg_ref, wo_ref, wffn_ref, w2_ref,
                         sin_ref, cos_ref, selq_ref, mask_ref, out_ref):
    NN = x_ref.shape[0]                               # rows per block (= nb*T)
    x = x_ref[...]                                    # (NN, D) f32
    residual = x

    # ---------- retention sublayer ----------
    xn = _rms(x, EPS)                                 # retention_layer_norm (gain folded into wqkvg)
    xnb = xn.astype(jnp.bfloat16)
    # fused [q | k*K^-0.5 | v | g | q@rot | k@rot]: ONE 384-wide bf16 matmul (f32 acc)
    proj = jnp.dot(xnb, wqkvg_ref[...], preferred_element_type=jnp.float32)  # (NN, 6D)
    q, k = proj[:, 0 * D:1 * D], proj[:, 1 * D:2 * D]
    v, g = proj[:, 2 * D:3 * D], proj[:, 3 * D:4 * D]
    q_rot, k_rot = proj[:, 4 * D:5 * D], proj[:, 5 * D:6 * D]

    # xpos (theta_shift): rot matmuls are pre-folded into the weights -> pure VPU.
    sin = sin_ref[...]
    cos = cos_ref[...]
    qr = q * cos + q_rot * sin                        # (NN, D)
    kr = k * cos + k_rot * sin

    # Head-batched retention: stack heads along sublanes with cross-head key
    # columns zeroed (constant selector) -> one score matmul + one score@v
    # matmul covering both heads (zero-padded FLOPs are free; fewer MXU pushes).
    q_bd = jnp.concatenate([qr] * H, axis=0) * selq_ref[...]        # (H*NN, D)
    s = jnp.dot(q_bd, kr.T, preferred_element_type=jnp.float32)     # (H*NN, NN)
    s = s * mask_ref[...]                              # per-head decay mask (block-diag across seqs)
    # L1 renorm: single row reduction in this layout; divide goes to the EUP.
    denom = jnp.clip(jnp.sum(jnp.abs(s), axis=-1, keepdims=True), 1.0, 5e4)
    s = s * pl.reciprocal(denom, approx=True)
    o_stack = jnp.dot(s, v, preferred_element_type=jnp.float32)     # (H*NN, DV)
    # head h rows / head h value columns; group_norm = RMS over head_dim, no affine
    o = jnp.concatenate(
        [_rms(o_stack[h * NN:(h + 1) * NN, h * DH:(h + 1) * DH], EPS)
         for h in range(H)], axis=-1)                                # (NN, DV), stays in vregs

    gated = (g * jax.nn.sigmoid(g)) * o               # swish gate (f32)
    x1 = residual + jnp.dot(gated.astype(jnp.bfloat16), wo_ref[...],
                            preferred_element_type=jnp.float32)      # +residual (alpha == 1)

    # ---------- GLU FFN sublayer ----------
    x1n = _rms(x1, EPS)                               # final_layer_norm (gain folded into wffn)
    ff = jnp.dot(x1n.astype(jnp.bfloat16), wffn_ref[...],
                 preferred_element_type=jnp.float32)  # (NN, 2F) = [gate | fc1], 256-wide
    gv, hv = ff[:, :F], ff[:, F:]                     # free 128-lane-boundary slices
    y = jnp.dot((hv * jax.nn.sigmoid(hv) * gv).astype(jnp.bfloat16), w2_ref[...],
                preferred_element_type=jnp.float32)   # (NN, D)
    out_ref[...] = x1 + y                             # +residual (alpha == 1)


# ---------------- wrapper ----------------
def _const_spec(shape):
    nd = len(shape)
    return pl.BlockSpec(shape, lambda g, _nd=nd: (0,) * _nd)


def decoder_layer(x, kp, consts, *, seqs_per_block):
    nb = seqs_per_block
    grid = B // nb
    N = nb * T
    sin_f, cos_f, sel_q, mask_stack = consts
    xf = x.reshape(B * T, D)

    in_specs = [
        pl.BlockSpec((N, D), lambda g: (g, 0)),
        _const_spec((D, 6 * D)),
        _const_spec((DV, D)),
        _const_spec((D, 2 * F)),
        _const_spec((F, D)),
        _const_spec((N, D)), _const_spec((N, D)),
        _const_spec((H * N, D)),
        _const_spec((H * N, N)),
    ]
    out = pl.pallas_call(
        decoder_layer_kernel,
        out_shape=jax.ShapeDtypeStruct((B * T, D), jnp.float32),
        grid=(grid,),
        in_specs=in_specs,
        out_specs=pl.BlockSpec((N, D), lambda g: (g, 0)),
        compiler_params=pltpu.CompilerParams(dimension_semantics=("parallel",)),
    )(xf, kp["wqkvg"], kp["wo"], kp["wffn"], kp["w2"],
      sin_f, cos_f, sel_q, mask_stack)
    return out.reshape(B, T, D), None   # (x, l_aux)


def _seqs_per_block():
    # Perf review: at these tiny shapes the kernel is launch/latency-bound;
    # a single grid step on one TensorCore (nb=B) matches/beats splitting the
    # 2-sequence batch across v7x's two cores (duplicated weight/constant DMAs,
    # fixed per-step overhead).  For larger B/T, move batch back to a "parallel"
    # grid axis with the plain (H, T, T) mask instead of growing the block-diag
    # mask (it scales O((B*T)^2) and would hit v7x's smaller VMEM first).
    return B


# ---------------- glue: rel_pos tables / constants / params ----------------
def make_rel_pos():
    # RetNetRelPos (parallel branch), per-sequence / per-head tables.
    angle = 1.0 / (10000 ** jnp.linspace(0.0, 1.0, K // 2))
    angle = jnp.repeat(angle, 2)                                   # [a0,a0,a1,a1,...]
    idx = jnp.arange(T, dtype=jnp.float32)
    sin = jnp.sin(idx[:, None] * angle[None, :]).astype(jnp.float32)   # (T, K)
    cos = jnp.cos(idx[:, None] * angle[None, :]).astype(jnp.float32)   # (T, K)
    decay = jnp.log(1.0 - 2.0 ** (-5.0 - jnp.arange(H, dtype=jnp.float32)))
    ii = jnp.arange(T)
    diff = (ii[:, None] - ii[None, :]).astype(jnp.float32)
    tri = diff >= 0
    mask = jnp.where(tri[None, :, :],
                     jnp.exp(diff[None, :, :] * decay[:, None, None]), 0.0)
    mask = mask / jnp.sqrt(jnp.sum(mask, axis=-1, keepdims=True))
    mask = mask.astype(jnp.float32)                                # (H, T, T)
    # per-head rotation matrix realizing rotate_every_two as x @ rot
    r = np.zeros((K, K), np.float32)
    for i in range(K // 2):
        r[2 * i + 1, 2 * i] = -1.0
        r[2 * i, 2 * i + 1] = 1.0
    return sin, cos, jnp.asarray(r), mask


def make_kernel_consts(rel_pos, nb):
    """Full-width tables for the fused kernel: nb sequences per block."""
    sin, cos, _rot_k, mask = rel_pos
    N = nb * T
    sin_f = jnp.tile(sin, (nb, H))                  # (N, D)
    cos_f = jnp.tile(cos, (nb, H))                  # (N, D)
    if nb == 1:
        mask_b = mask                               # (H, T, T)
    else:
        eye = jnp.eye(nb, dtype=jnp.float32)        # block-diag decay mask across sequences
        mask_b = jnp.einsum("ab,hts->hatbs", eye, mask).reshape(H, N, N)
    mask_stack = mask_b.reshape(H * N, N)           # heads stacked along rows
    # head selector for the sublane-stacked q: 1 where row-head == column-head
    row_head = np.arange(H * N) // N
    col_head = np.arange(D) // K
    sel_q = (row_head[:, None] == col_head[None, :]).astype(np.float32)  # (H*N, D)
    return sin_f, cos_f, jnp.asarray(sel_q), mask_stack


def make_params(key):
    ks = jax.random.split(key, 8)

    def lin(k, fan_in, fan_out):
        return jax.random.normal(k, (fan_in, fan_out), jnp.float32) / np.sqrt(fan_in)

    return {
        "rms1": jnp.ones((1, D), jnp.float32),
        "rms2": jnp.ones((1, D), jnp.float32),
        "wq": lin(ks[0], D, D),
        "wk": lin(ks[1], D, D),
        "wv": lin(ks[2], D, DV),
        "wg": lin(ks[3], D, DV),
        "wo": lin(ks[4], DV, D),
        "wgate": lin(ks[5], D, F),
        "w1": lin(ks[6], D, F),
        "w2": lin(ks[7], F, D),
    }


def prepare_kernel_params(p, rel_pos):
    """Fused bf16 matmul weights (f32 accumulation in-kernel).

    - K**-0.5 folded into the k columns
    - RMSNorm gains folded into the input dim of the projections they feed
    - wq@rot / wk@rot precomputed so the in-kernel rot matmuls disappear
    - [q|k|v|g|q_rot|k_rot] fused to (D, 384); [wgate|w1] fused to (D, 256)
    """
    _sin, _cos, rot_k, _mask = rel_pos
    rot_full = np.zeros((D, D), np.float32)         # block-diagonal rotate_every_two
    rot_np = np.asarray(rot_k)
    for h in range(H):
        rot_full[h * K:(h + 1) * K, h * K:(h + 1) * K] = rot_np
    rot = jnp.asarray(rot_full)

    g1 = p["rms1"][0][:, None]                      # (D, 1) gains, applied on input dim
    g2 = p["rms2"][0][:, None]
    wq = g1 * p["wq"]
    wk = g1 * (p["wk"] * SCALING)
    wv = g1 * p["wv"]
    wg = g1 * p["wg"]
    wqkvg = jnp.concatenate([wq, wk, wv, wg, wq @ rot, wk @ rot], axis=-1)   # (D, 6D)
    wffn = g2 * jnp.concatenate([p["wgate"], p["w1"]], axis=-1)              # (D, 2F)

    bf = jnp.bfloat16
    return {
        "wqkvg": wqkvg.astype(bf),
        "wo": p["wo"].astype(bf),
        "wffn": wffn.astype(bf),
        "w2": p["w2"].astype(bf),
    }


# ---------------- pure-JAX f32 reference for validation ----------------
def reference(x, p, rel_pos):
    sin, cos, rot, mask = rel_pos

    def rms(v):
        return v * jax.lax.rsqrt(jnp.mean(v * v, -1, keepdims=True) + EPS)

    res = x
    xn = rms(x) * p["rms1"][0]
    q = xn @ p["wq"]
    k = (xn @ p["wk"]) * SCALING
    v = xn @ p["wv"]
    g = xn @ p["wg"]
    qh = q.reshape(B, T, H, K).transpose(0, 2, 1, 3)
    kh = k.reshape(B, T, H, K).transpose(0, 2, 1, 3)
    vh = v.reshape(B, T, H, DH).transpose(0, 2, 1, 3)
    qr = qh * cos + (qh @ rot) * sin
    kr = kh * cos + (kh @ rot) * sin
    qk = jnp.einsum("bhtk,bhsk->bhts", qr, kr) * mask[None]
    qk = qk / jnp.clip(jnp.sum(jnp.abs(qk), -1, keepdims=True), 1.0, 5e4)
    o = jnp.einsum("bhts,bhsd->bhtd", qk, vh)
    o = rms(o)
    o = o.transpose(0, 2, 1, 3).reshape(B, T, DV)
    o = jax.nn.silu(g) * o
    x1 = res + o @ p["wo"]

    res2 = x1
    xn2 = rms(x1) * p["rms2"][0]
    y = (jax.nn.silu(xn2 @ p["w1"]) * (xn2 @ p["wgate"])) @ p["w2"]
    return res2 + y


if __name__ == "__main__":
    key = jax.random.PRNGKey(0)
    kx, kp = jax.random.split(key)
    x = jax.random.normal(kx, (B, T, D), jnp.float32)
    params = make_params(kp)
    rel_pos = make_rel_pos()

    nb = _seqs_per_block()
    kparams = prepare_kernel_params(params, rel_pos)
    kconsts = make_kernel_consts(rel_pos, nb)

    fwd = jax.jit(functools.partial(decoder_layer, seqs_per_block=nb))
    out, l_aux = fwd(x, kparams, kconsts)
    out = jax.block_until_ready(out)

    ref = reference(x, params, rel_pos)
    assert out.shape == (B, T, D)
    assert l_aux is None
    # Tolerance vs. the f32 reference: bf16 matmul operands (f32 accumulation)
    # + approx EUP reciprocal for the L1 renorm.
    np.testing.assert_allclose(np.asarray(out), np.asarray(ref), rtol=3e-2, atol=3e-2)
    print("KERNEL_OK")
</pallas_src>

<mosaic_0001>
module attributes {stable_mosaic.version = 11 : i64} {
  func.func @decoder_layer_kernel(%arg0: i32, %arg1: memref<32x64xf32, #tpu.memory_space<vmem>>, %arg2: memref<64x384xbf16, #tpu.memory_space<vmem>>, %arg3: memref<64x64xbf16, #tpu.memory_space<vmem>>, %arg4: memref<64x256xbf16, #tpu.memory_space<vmem>>, %arg5: memref<128x64xbf16, #tpu.memory_space<vmem>>, %arg6: memref<32x64xf32, #tpu.memory_space<vmem>>, %arg7: memref<32x64xf32, #tpu.memory_space<vmem>>, %arg8: memref<64x64xf32, #tpu.memory_space<vmem>>, %arg9: memref<64x32xf32, #tpu.memory_space<vmem>>, %arg10: memref<32x64xf32, #tpu.memory_space<vmem>>) attributes {dimension_semantics = [#tpu.dimension_semantics<parallel>], iteration_bounds = array<i64: 1>, scalar_prefetch = 0 : i64, scratch_operands = 0 : i64, tpu.core_type = #tpu.core_type<tc>, window_params = [{transform_indices = @transform_0, window_bounds = array<i64: 32, 64>}, {pipeline_mode = #tpu.pipeline_mode<synchronous>, transform_indices = @transform_1, window_bounds = array<i64: 64, 384>}, {pipeline_mode = #tpu.pipeline_mode<synchronous>, transform_indices = @transform_2, window_bounds = array<i64: 64, 64>}, {pipeline_mode = #tpu.pipeline_mode<synchronous>, transform_indices = @transform_3, window_bounds = array<i64: 64, 256>}, {pipeline_mode = #tpu.pipeline_mode<synchronous>, transform_indices = @transform_4, window_bounds = array<i64: 128, 64>}, {pipeline_mode = #tpu.pipeline_mode<synchronous>, transform_indices = @transform_5, window_bounds = array<i64: 32, 64>}, {pipeline_mode = #tpu.pipeline_mode<synchronous>, transform_indices = @transform_6, window_bounds = array<i64: 32, 64>}, {pipeline_mode = #tpu.pipeline_mode<synchronous>, transform_indices = @transform_7, window_bounds = array<i64: 64, 64>}, {pipeline_mode = #tpu.pipeline_mode<synchronous>, transform_indices = @transform_8, window_bounds = array<i64: 64, 32>}, {transform_indices = @transform_9, window_bounds = array<i64: 32, 64>}]} {
    %c0 = arith.constant 0 : index
    %c0_0 = arith.constant 0 : index
    %0 = vector.load %arg1[%c0, %c0_0] : memref<32x64xf32, #tpu.memory_space<vmem>>, vector<32x64xf32>
    %1 = arith.mulf %0, %0 : vector<32x64xf32>
    %cst = arith.constant dense<0.000000e+00> : vector<32xf32>
    %2 = vector.multi_reduction <add>, %1, %cst [1] : vector<32x64xf32> to vector<32xf32>
    %3 = vector.shape_cast %2 : vector<32xf32> to vector<32x1xf32>
    %cst_1 = arith.constant 6.400000e+01 : f32
    %4 = vector.broadcast %cst_1 : f32 to vector<32x1xf32>
    %5 = arith.divf %3, %4 : vector<32x1xf32>
    %cst_2 = arith.constant 9.99999974E-6 : f32
    %6 = vector.broadcast %cst_2 : f32 to vector<32x1xf32>
    %7 = arith.addf %5, %6 : vector<32x1xf32>
    %8 = math.rsqrt %7 : vector<32x1xf32>
    %9 = vector.broadcast %8 : vector<32x1xf32> to vector<32x64xf32>
    %10 = arith.mulf %0, %9 : vector<32x64xf32>
    %11 = arith.truncf %10 : vector<32x64xf32> to vector<32x64xbf16>
    %c0_3 = arith.constant 0 : index
    %c0_4 = arith.constant 0 : index
    %12 = vector.load %arg2[%c0_3, %c0_4] : memref<64x384xbf16, #tpu.memory_space<vmem>>, vector<64x384xbf16>
    %cst_5 = arith.constant dense<0.000000e+00> : vector<32x384xf32>
    %13 = tpu.matmul %11, %12, %cst_5 {dimension_numbers = #tpu.dot_dimension_numbers<[1], [0], [0], [1], [0, 0, 1, 1], [], []>} : vector<32x64xbf16>, vector<64x384xbf16>, vector<32x384xf32> -> vector<32x384xf32>
    %14 = vector.extract_strided_slice %13 {offsets = [0, 0], sizes = [32, 64], strides = [1, 1]} : vector<32x384xf32> to vector<32x64xf32>
    %15 = vector.extract_strided_slice %13 {offsets = [0, 64], sizes = [32, 64], strides = [1, 1]} : vector<32x384xf32> to vector<32x64xf32>
    %16 = vector.extract_strided_slice %13 {offsets = [0, 128], sizes = [32, 64], strides = [1, 1]} : vector<32x384xf32> to vector<32x64xf32>
    %17 = vector.extract_strided_slice %13 {offsets = [0, 192], sizes = [32, 64], strides = [1, 1]} : vector<32x384xf32> to vector<32x64xf32>
    %18 = vector.extract_strided_slice %13 {offsets = [0, 256], sizes = [32, 64], strides = [1, 1]} : vector<32x384xf32> to vector<32x64xf32>
    %19 = vector.extract_strided_slice %13 {offsets = [0, 320], sizes = [32, 64], strides = [1, 1]} : vector<32x384xf32> to vector<32x64xf32>
    %c0_6 = arith.constant 0 : index
    %c0_7 = arith.constant 0 : index
    %20 = vector.load %arg6[%c0_6, %c0_7] : memref<32x64xf32, #tpu.memory_space<vmem>>, vector<32x64xf32>
    %c0_8 = arith.constant 0 : index
    %c0_9 = arith.constant 0 : index
    %21 = vector.load %arg7[%c0_8, %c0_9] : memref<32x64xf32, #tpu.memory_space<vmem>>, vector<32x64xf32>
    %22 = arith.mulf %14, %21 : vector<32x64xf32>
    %23 = arith.mulf %18, %20 : vector<32x64xf32>
    %24 = arith.addf %22, %23 : vector<32x64xf32>
    %25 = arith.mulf %15, %21 : vector<32x64xf32>
    %26 = arith.mulf %19, %20 : vector<32x64xf32>
    %27 = arith.addf %25, %26 : vector<32x64xf32>
    %28 = tpu.concatenate %24, %24 in 0 : vector<32x64xf32>, vector<32x64xf32> -> vector<64x64xf32>
    %c0_10 = arith.constant 0 : index
    %c0_11 = arith.constant 0 : index
    %29 = vector.load %arg8[%c0_10, %c0_11] : memref<64x64xf32, #tpu.memory_space<vmem>>, vector<64x64xf32>
    %30 = arith.mulf %28, %29 : vector<64x64xf32>
    %31 = tpu.transpose %27, [1, 0] : vector<32x64xf32> -> vector<64x32xf32>
    %cst_12 = arith.constant dense<0.000000e+00> : vector<64x32xf32>
    %32 = tpu.matmul %30, %31, %cst_12 {dimension_numbers = #tpu.dot_dimension_numbers<[1], [0], [0], [1], [0, 0, 1, 1], [], []>} : vector<64x64xf32>, vector<64x32xf32>, vector<64x32xf32> -> vector<64x32xf32>
    %c0_13 = arith.constant 0 : index
    %c0_14 = arith.constant 0 : index
    %33 = vector.load %arg9[%c0_13, %c0_14] : memref<64x32xf32, #tpu.memory_space<vmem>>, vector<64x32xf32>
    %34 = arith.mulf %32, %33 : vector<64x32xf32>
    %35 = math.absf %34 : vector<64x32xf32>
    %cst_15 = arith.constant dense<0.000000e+00> : vector<64xf32>
    %36 = vector.multi_reduction <add>, %35, %cst_15 [1] : vector<64x32xf32> to vector<64xf32>
    %37 = vector.shape_cast %36 : vector<64xf32> to vector<64x1xf32>
    %cst_16 = arith.constant 1.000000e+00 : f32
    %cst_17 = arith.constant 5.000000e+04 : f32
    %38 = vector.broadcast %cst_16 : f32 to vector<64x1xf32>
    %39 = arith.maximumf %38, %37 : vector<64x1xf32>
    %40 = vector.broadcast %cst_17 : f32 to vector<64x1xf32>
    %41 = arith.minimumf %40, %39 : vector<64x1xf32>
    %42 = tpu.reciprocal %41 {approx = true} : vector<64x1xf32> -> vector<64x1xf32>
    %43 = vector.broadcast %42 : vector<64x1xf32> to vector<64x32xf32>
    %44 = arith.mulf %34, %43 : vector<64x32xf32>
    %cst_18 = arith.constant dense<0.000000e+00> : vector<64x64xf32>
    %45 = tpu.matmul %44, %16, %cst_18 {dimension_numbers = #tpu.dot_dimension_numbers<[1], [0], [0], [1], [0, 0, 1, 1], [], []>} : vector<64x32xf32>, vector<32x64xf32>, vector<64x64xf32> -> vector<64x64xf32>
    %46 = vector.extract_strided_slice %45 {offsets = [0, 0], sizes = [32, 32], strides = [1, 1]} : vector<64x64xf32> to vector<32x32xf32>
    %47 = arith.mulf %46, %46 : vector<32x32xf32>
    %cst_19 = arith.constant dense<0.000000e+00> : vector<32xf32>
    %48 = vector.multi_reduction <add>, %47, %cst_19 [1] : vector<32x32xf32> to vector<32xf32>
    %49 = vector.shape_cast %48 : vector<32xf32> to vector<32x1xf32>
    %cst_20 = arith.constant 3.200000e+01 : f32
    %50 = vector.broadcast %cst_20 : f32 to vector<32x1xf32>
    %51 = arith.divf %49, %50 : vector<32x1xf32>
    %cst_21 = arith.constant 9.99999974E-6 : f32
    %52 = vector.broadcast %cst_21 : f32 to vector<32x1xf32>
    %53 = arith.addf %51, %52 : vector<32x1xf32>
    %54 = math.rsqrt %53 : vector<32x1xf32>
    %55 = vector.broadcast %54 : vector<32x1xf32> to vector<32x32xf32>
    %56 = arith.mulf %46, %55 : vector<32x32xf32>
    %57 = vector.extract_strided_slice %45 {offsets = [32, 32], sizes = [32, 32], strides = [1, 1]} : vector<64x64xf32> to vector<32x32xf32>
    %58 = arith.mulf %57, %57 : vector<32x32xf32>
    %cst_22 = arith.constant dense<0.000000e+00> : vector<32xf32>
    %59 = vector.multi_reduction <add>, %58, %cst_22 [1] : vector<32x32xf32> to vector<32xf32>
    %60 = vector.shape_cast %59 : vector<32xf32> to vector<32x1xf32>
    %cst_23 = arith.constant 3.200000e+01 : f32
    %61 = vector.broadcast %cst_23 : f32 to vector<32x1xf32>
    %62 = arith.divf %60, %61 : vector<32x1xf32>
    %cst_24 = arith.constant 9.99999974E-6 : f32
    %63 = vector.broadcast %cst_24 : f32 to vector<32x1xf32>
    %64 = arith.addf %62, %63 : vector<32x1xf32>
    %65 = math.rsqrt %64 : vector<32x1xf32>
    %66 = vector.broadcast %65 : vector<32x1xf32> to vector<32x32xf32>
    %67 = arith.mulf %57, %66 : vector<32x32xf32>
    %68 = tpu.concatenate %56, %67 in 1 : vector<32x32xf32>, vector<32x32xf32> -> vector<32x64xf32>
    %69 = arith.negf %17 : vector<32x64xf32>
    %70 = math.exp %69 : vector<32x64xf32>
    %cst_25 = arith.constant 1.000000e+00 : f32
    %71 = vector.broadcast %cst_25 : f32 to vector<32x64xf32>
    %72 = arith.addf %71, %70 : vector<32x64xf32>
    %73 = arith.divf %71, %72 : vector<32x64xf32>
    %74 = arith.mulf %17, %73 : vector<32x64xf32>
    %75 = arith.mulf %74, %68 : vector<32x64xf32>
    %76 = arith.truncf %75 : vector<32x64xf32> to vector<32x64xbf16>
    %c0_26 = arith.constant 0 : index
    %c0_27 = arith.constant 0 : index
    %77 = vector.load %arg3[%c0_26, %c0_27] : memref<64x64xbf16, #tpu.memory_space<vmem>>, vector<64x64xbf16>
    %cst_28 = arith.constant dense<0.000000e+00> : vector<32x64xf32>
    %78 = tpu.matmul %76, %77, %cst_28 {dimension_numbers = #tpu.dot_dimension_numbers<[1], [0], [0], [1], [0, 0, 1, 1], [], []>} : vector<32x64xbf16>, vector<64x64xbf16>, vector<32x64xf32> -> vector<32x64xf32>
    %79 = arith.addf %0, %78 : vector<32x64xf32>
    %80 = arith.mulf %79, %79 : vector<32x64xf32>
    %cst_29 = arith.constant dense<0.000000e+00> : vector<32xf32>
    %81 = vector.multi_reduction <add>, %80, %cst_29 [1] : vector<32x64xf32> to vector<32xf32>
    %82 = vector.shape_cast %81 : vector<32xf32> to vector<32x1xf32>
    %cst_30 = arith.constant 6.400000e+01 : f32
    %83 = vector.broadcast %cst_30 : f32 to vector<32x1xf32>
    %84 = arith.divf %82, %83 : vector<32x1xf32>
    %cst_31 = arith.constant 9.99999974E-6 : f32
    %85 = vector.broadcast %cst_31 : f32 to vector<32x1xf32>
    %86 = arith.addf %84, %85 : vector<32x1xf32>
    %87 = math.rsqrt %86 : vector<32x1xf32>
    %88 = vector.broadcast %87 : vector<32x1xf32> to vector<32x64xf32>
    %89 = arith.mulf %79, %88 : vector<32x64xf32>
    %90 = arith.truncf %89 : vector<32x64xf32> to vector<32x64xbf16>
    %c0_32 = arith.constant 0 : index
    %c0_33 = arith.constant 0 : index
    %91 = vector.load %arg4[%c0_32, %c0_33] : memref<64x256xbf16, #tpu.memory_space<vmem>>, vector<64x256xbf16>
    %cst_34 = arith.constant dense<0.000000e+00> : vector<32x256xf32>
    %92 = tpu.matmul %90, %91, %cst_34 {dimension_numbers = #tpu.dot_dimension_numbers<[1], [0], [0], [1], [0, 0, 1, 1], [], []>} : vector<32x64xbf16>, vector<64x256xbf16>, vector<32x256xf32> -> vector<32x256xf32>
    %93 = vector.extract_strided_slice %92 {offsets = [0, 0], sizes = [32, 128], strides = [1, 1]} : vector<32x256xf32> to vector<32x128xf32>
    %94 = vector.extract_strided_slice %92 {offsets = [0, 128], sizes = [32, 128], strides = [1, 1]} : vector<32x256xf32> to vector<32x128xf32>
    %95 = arith.negf %94 : vector<32x128xf32>
    %96 = math.exp %95 : vector<32x128xf32>
    %cst_35 = arith.constant 1.000000e+00 : f32
    %97 = vector.broadcast %cst_35 : f32 to vector<32x128xf32>
    %98 = arith.addf %97, %96 : vector<32x128xf32>
    %99 = arith.divf %97, %98 : vector<32x128xf32>
    %100 = arith.mulf %94, %99 : vector<32x128xf32>
    %101 = arith.mulf %100, %93 : vector<32x128xf32>
    %102 = arith.truncf %101 : vector<32x128xf32> to vector<32x128xbf16>
    %c0_36 = arith.constant 0 : index
    %c0_37 = arith.constant 0 : index
    %103 = vector.load %arg5[%c0_36, %c0_37] : memref<128x64xbf16, #tpu.memory_space<vmem>>, vector<128x64xbf16>
    %cst_38 = arith.constant dense<0.000000e+00> : vector<32x64xf32>
    %104 = tpu.matmul %102, %103, %cst_38 {dimension_numbers = #tpu.dot_dimension_numbers<[1], [0], [0], [1], [0, 0, 1, 1], [], []>} : vector<32x128xbf16>, vector<128x64xbf16>, vector<32x64xf32> -> vector<32x64xf32>
    %105 = arith.addf %79, %104 : vector<32x64xf32>
    %c0_39 = arith.constant 0 : index
    %c0_40 = arith.constant 0 : index
    %106 = vector.load %arg10[%c0_39, %c0_40] : memref<32x64xf32, #tpu.memory_space<vmem>>, vector<32x64xf32>
    tpu.vector_store %arg10[%c0_39, %c0_40], %105 {strides = array<i32>} : memref<32x64xf32, #tpu.memory_space<vmem>>, vector<32x64xf32>,
    return
  }
  func.func @transform_0(%arg0: i32) -> (i32, i32) {
    %c0_i32 = arith.constant 0 : i32
    %c0_i32_0 = arith.constant 0 : i32
    return %arg0, %c0_i32 : i32, i32
  }
  func.func @transform_1(%arg0: i32) -> (i32, i32) {
    %c0_i32 = arith.constant 0 : i32
    %c0_i32_0 = arith.constant 0 : i32
    %c0_i32_1 = arith.constant 0 : i32
    return %c0_i32, %c0_i32_0 : i32, i32
  }
  func.func @transform_2(%arg0: i32) -> (i32, i32) {
    %c0_i32 = arith.constant 0 : i32
    %c0_i32_0 = arith.constant 0 : i32
    %c0_i32_1 = arith.constant 0 : i32
    return %c0_i32, %c0_i32_0 : i32, i32
  }
  func.func @transform_3(%arg0: i32) -> (i32, i32) {
    %c0_i32 = arith.constant 0 : i32
    %c0_i32_0 = arith.constant 0 : i32
    %c0_i32_1 = arith.constant 0 : i32
    return %c0_i32, %c0_i32_0 : i32, i32
  }
  func.func @transform_4(%arg0: i32) -> (i32, i32) {
    %c0_i32 = arith.constant 0 : i32
    %c0_i32_0 = arith.constant 0 : i32
    %c0_i32_1 = arith.constant 0 : i32
    return %c0_i32, %c0_i32_0 : i32, i32
  }
  func.func @transform_5(%arg0: i32) -> (i32, i32) {
    %c0_i32 = arith.constant 0 : i32
    %c0_i32_0 = arith.constant 0 : i32
    %c0_i32_1 = arith.constant 0 : i32
    return %c0_i32, %c0_i32_0 : i32, i32
  }
  func.func @transform_6(%arg0: i32) -> (i32, i32) {
    %c0_i32 = arith.constant 0 : i32
    %c0_i32_0 = arith.constant 0 : i32
    %c0_i32_1 = arith.constant 0 : i32
    return %c0_i32, %c0_i32_0 : i32, i32
  }
  func.func @transform_7(%arg0: i32) -> (i32, i32) {
    %c0_i32 = arith.constant 0 : i32
    %c0_i32_0 = arith.constant 0 : i32
    %c0_i32_1 = arith.constant 0 : i32
    return %c0_i32, %c0_i32_0 : i32, i32
  }
  func.func @transform_8(%arg0: i32) -> (i32, i32) {
    %c0_i32 = arith.constant 0 : i32
    %c0_i32_0 = arith.constant 0 : i32
    %c0_i32_1 = arith.constant 0 : i32
    return %c0_i32, %c0_i32_0 : i32, i32
  }
  func.func @transform_9(%arg0: i32) -> (i32, i32) {
    %c0_i32 = arith.constant 0 : i32
    %c0_i32_0 = arith.constant 0 : i32
    return %arg0, %c0_i32 : i32, i32
  }
}

</mosaic_0001>

<bundles_post_ra>
// kernel: decoder_layer.1
= control target key start
LH: loop header
LB: loop body
LE: loop exit
PB: predicated region body
PF: predicated region fallthrough
CT: control target
= control target key end

     0   :  { %14 = vsyncpa [#allocation3], 0  ;;  %s2313_s0 = inlined_call_operand.hbm [shape: f32[32,64], index: 0, kind: input, shape index: {}]   ;;  %s2314_s1 = inlined_call_operand.vmem [shape: bf16[64,384], index: 1, kind: input, shape index: {}]   ;;  %s2315_s2 = inlined_call_operand.hbm [shape: bf16[64,64], index: 2, kind: input, shape index: {}]   ;;  %s2316_s3 = inlined_call_operand.vmem [shape: bf16[64,256], index: 3, kind: input, shape index: {}]   ;;  %s2317_s4 = inlined_call_operand.vmem [shape: bf16[128,64], index: 4, kind: input, shape index: {}]   ;;  %s2318_s5 = inlined_call_operand.hbm [shape: f32[32,64], index: 5, kind: input, shape index: {}]   ;;  %s2319_s6 = inlined_call_operand.hbm [shape: f32[32,64], index: 6, kind: input, shape index: {}]   ;;  %s2320_s7 = inlined_call_operand.hbm [shape: f32[64,64], index: 7, kind: input, shape index: {}]   ;;  %s2321_s8 = inlined_call_operand.vmem [shape: f32[64,32], index: 8, kind: input, shape index: {}]   ;;  %s2322_s9 = inlined_call_operand.hbm [shape: f32[32,64], index: 9, kind: output, shape index: {}]  }
   0x1   :  { %15 = vsyncpa [#allocation6], 0 }
   0x2   :  { %16 = vsyncpa [#allocation9], 0 }
   0x3   :  { %17 = vsyncpa [#allocation4], 0  ;;  %s1816_s30 = smov [#allocation5]   ;;  %s1676_s13 = scalar_lea.hbm %s2315_s2, 512 }
   0x4   :  { %s37_s10 = sshll.u32 %s1816_s30, 4  ;;  %p1677_p0 = scmp.ne.s32.totalorder %s2315_s2, %s1676_s13  ;;  %s38_s10 = int_to_ptr.vmem [resolvable:$true] %s37_s10 }
   0x5   :  { %p1680_p1 = scmp.lt.u32.totalorder %s1676_s13, %s2315_s2 }
   0x7   :  { %p1682_p2 = pnand %p1680_p1, %p1677_p0 }
   0x9   :  { %1685 = shalt.err (!%p1682_p2)
}
   0xa   :  { %s1686_s18 = scalar_lea.vmem %s38_s10, 512  ;;  %p1691_p4 = scmp.lt.s32.totalorder %s38_s10, %s38_s10 }
   0xb   :  { %p1687_p3 = scmp.ne.s32.totalorder %s38_s10, %s1686_s18  ;;  %p1692_p5 = scmp.lt.s32.totalorder %s1686_s18, %s1686_s18 }
   0xd   :  { %p1693_p6 = por %p1692_p5, %p1691_p4 }
   0xf   :  { %p1694_p7 = pnand %p1693_p6, %p1687_p3 }
  0x11   :  { %1697 = shalt.err (!%p1694_p7)
}
  0x12   :  { %s1817_s19 = smov 64   ;;  %s1818_s20 = smov 4  }
  0x13   :  { %43 = dma.hbm_to_vmem [thread:$0]  %s2315_s2, 512, %s38_s10, [#allocation6], %s1817_s19, %s1817_s19, %s1818_s20  }
  0x14   :  { %s1819_s23 = smov [#allocation8]   ;;  %s1820_s25 = smov [#allocation2]  }
  0x15   :  { %s65_s24 = sshll.u32 %s1819_s23, 4  ;;  %s23_s26 = sshll.u32 %s1820_s25, 4  ;;  %s66_s24 = int_to_ptr.vmem [resolvable:$true] %s65_s24  ;;  %s24_s26 = int_to_ptr.vmem [resolvable:$true] %s23_s26 }
  0x16   :  { %s1698_s29 = scalar_lea.hbm %s2319_s6, 512 }
  0x17   :  { %p1699_p8 = scmp.ne.s32.totalorder %s2319_s6, %s1698_s29  ;;  %p1702_p9 = scmp.lt.u32.totalorder %s1698_s29, %s2319_s6 }
  0x19   :  { %p1704_p10 = pnand %p1702_p9, %p1699_p8 }
  0x1b   :  { %1707 = shalt.err (!%p1704_p10)
}
  0x1c   :  { %s1708_s2 = scalar_lea.vmem %s66_s24, 512  ;;  %p1713_p12 = scmp.lt.s32.totalorder %s66_s24, %s66_s24 }
  0x1d   :  { %p1709_p11 = scmp.ne.s32.totalorder %s66_s24, %s1708_s2  ;;  %p1714_p13 = scmp.lt.s32.totalorder %s1708_s2, %s1708_s2 }
  0x1f   :  { %p1715_p0 = por %p1714_p13, %p1713_p12 }
  0x21   :  { %p1716_p1 = pnand %p1715_p0, %p1709_p11 }
  0x23   :  { %1719 = shalt.err (!%p1716_p1)
}
  0x24   :  { %s1821_s10 = smov 128   ;;  %s1822_s14 = smov 8  }
  0x25   :  { %71 = dma.hbm_to_vmem [thread:$0]  %s2319_s6, 512, %s66_s24, [#allocation9], %s1821_s10, %s1821_s10, %s1822_s14  }
  0x26   :  { %s1720_s20 = scalar_lea.hbm %s2313_s0, 512 }
  0x27   :  { %p1721_p2 = scmp.ne.s32.totalorder %s2313_s0, %s1720_s20  ;;  %p1724_p3 = scmp.lt.u32.totalorder %s1720_s20, %s2313_s0 }
  0x29   :  { %p1726_p4 = pnand %p1724_p3, %p1721_p2 }
  0x2b   :  { %1729 = shalt.err (!%p1726_p4)
}
  0x2c   :  { %s1730_s27 = scalar_lea.vmem %s24_s26, 512  ;;  %p1735_p6 = scmp.lt.s32.totalorder %s24_s26, %s24_s26 }
  0x2d   :  { %p1731_p5 = scmp.ne.s32.totalorder %s24_s26, %s1730_s27  ;;  %p1736_p7 = scmp.lt.s32.totalorder %s1730_s27, %s1730_s27 }
  0x2f   :  { %p1737_p8 = por %p1736_p7, %p1735_p6 }
  0x31   :  { %p1738_p9 = pnand %p1737_p8, %p1731_p5 }
  0x33   :  { %1741 = shalt.err (!%p1738_p9)
}
  0x34   :  { %29 = dma.hbm_to_vmem [thread:$0]  %s2313_s0, 512, %s24_s26, [#allocation3], %s1821_s10, %s1821_s10, %s1822_s14  }
  0x35   :  { %s1823_s28 = smov [#allocation7]   ;;  %s1824_s30 = smov [#allocation10]  }
  0x36   :  { %s53_s29 = sshll.u32 %s1823_s28, 4  ;;  %s77_s11 = sshll.u32 %s1824_s30, 4  ;;  %s54_s29 = int_to_ptr.vmem [resolvable:$true] %s53_s29  ;;  %s78_s11 = int_to_ptr.vmem [resolvable:$true] %s77_s11 }
  0x37   :  { %s1742_s2 = scalar_lea.hbm %s2318_s5, 512 }
  0x38   :  { %p1743_p10 = scmp.ne.s32.totalorder %s2318_s5, %s1742_s2  ;;  %p1746_p11 = scmp.lt.u32.totalorder %s1742_s2, %s2318_s5 }
  0x3a   :  { %p1748_p12 = pnand %p1746_p11, %p1743_p10 }
  0x3c   :  { %1751 = shalt.err (!%p1748_p12)
}
  0x3d   :  { %s1752_s0 = scalar_lea.vmem %s54_s29, 512  ;;  %p1757_p0 = scmp.lt.s32.totalorder %s54_s29, %s54_s29 }
  0x3e   :  { %p1753_p13 = scmp.ne.s32.totalorder %s54_s29, %s1752_s0  ;;  %p1758_p1 = scmp.lt.s32.totalorder %s1752_s0, %s1752_s0 }
  0x40   :  { %p1759_p2 = por %p1758_p1, %p1757_p0 }
  0x42   :  { %p1760_p3 = pnand %p1759_p2, %p1753_p13 }
  0x44   :  { %1763 = shalt.err (!%p1760_p3)
}
  0x45   :  { %59 = dma.hbm_to_vmem [thread:$0]  %s2318_s5, 512, %s54_s29, [#allocation6], %s1821_s10, %s1821_s10, %s1822_s14  }
  0x46   :  { %s1764_s23 = scalar_lea.hbm %s2320_s7, 1024 }
  0x47   :  { %p1765_p4 = scmp.ne.s32.totalorder %s2320_s7, %s1764_s23  ;;  %p1768_p5 = scmp.lt.u32.totalorder %s1764_s23, %s2320_s7 }
  0x49   :  { %p1770_p6 = pnand %p1768_p5, %p1765_p4 }
  0x4b   :  { %1773 = shalt.err (!%p1770_p6)
}
  0x4c   :  { %s1774_s28 = scalar_lea.vmem %s78_s11, 1024  ;;  %p1779_p8 = scmp.lt.s32.totalorder %s78_s11, %s78_s11 }
  0x4d   :  { %p1775_p7 = scmp.ne.s32.totalorder %s78_s11, %s1774_s28  ;;  %p1780_p9 = scmp.lt.s32.totalorder %s1774_s28, %s1774_s28 }
  0x4f   :  { %p1781_p10 = por %p1780_p9, %p1779_p8 }
  0x51   :  { %p1782_p11 = pnand %p1781_p10, %p1775_p7 }
  0x53   :  { %1785 = shalt.err (!%p1782_p11)
}
  0x54   :  { %83 = dma.hbm_to_vmem [thread:$0]  %s2320_s7, 1024, %s78_s11, [#allocation9], %s1821_s10, %s1821_s10, %s1822_s14  }
  0x55   :  { %1808 = dma.done.wait [#allocation3], 512  }
  0x56   :  { %1809 = vsyncadd [#allocation3], 4294966784 }
  0x57   :  { %1810 = dma.done.wait [#allocation6], 1024  }
  0x58   :  { %1811 = vsyncadd [#allocation6], 4294966272 }
  0x59   :  { %1812 = dma.done.wait [#allocation9], 1536  }
  0x5a   :  { %1813 = vsyncadd [#allocation9], 4294965760  ;;  %v1952_v0 = vld [vmem:[#allocation2 + $0x10] sm:$0xff]  ;;  %vm110_vm0 = vcmask 523264   ;;  %v1954_v1 = vld [vmem:[#allocation2] sm:$0xff]  ;;  %v1825_v21 = vmov 0  }
  0x5b   :  { %v1956_v2 = vld [vmem:[#allocation2 + $0x18] sm:$0xff]  ;;  %v108_v3 = vmul.f32 %v1952_v0, %v1952_v0  ;;  %v106_v4 = vmul.f32 %v1954_v1, %v1954_v1  ;;  %v1964_v6 = vld [vmem:[#allocation2 + $0x8] sm:$0xff]  ;;  %v1556_v12 = vld [vmem:[%s2314_s1 + $0x4] ss:$12 sps:$4 sm:$0xff]   ;;  %260 = vmatprep.mubr.bf16.mxu0 %v1825_v21  ;;  %vm583_vm2 = vcmask 261120  }
  0x5c   :  { %v109_v5 = vmul.f32 %v1956_v2, %v1956_v2  ;;  %v107_v7 = vmul.f32 %v1964_v6, %v1964_v6  ;;  %v1558_v13 = vld [vmem:[%s2314_s1] ss:$12 sps:$4 sm:$0xff]   ;;  %v1559_v14 = vld [vmem:[%s2314_s1 + $0x8] ss:$12 sps:$4 sm:$0xff]   ;;  %228 = vmatprep.subr.bf16.mxu0 %v1556_v12  ;;  %v1562_v16 = vld [vmem:[%s2314_s1 + $0x18] ss:$12 sps:$4 sm:$0xff]  }
  0x5d   :  { %v117_v8 = vsel %vm110_vm0, %v108_v3, 0.0  ;;  %v111_v9 = vsel %vm110_vm0, %v106_v4, 0.0  ;;  %229 = vmatpush1.bf16.msra.mxu0 %v1558_v13  ;;  %1430 = vmatprep.subr.bf16.mxu1 %v1559_v14  ;;  %v1560_v15 = vld [vmem:[%s2314_s1 + $0x1c] ss:$12 sps:$4 sm:$0xff]   ;;  %v1563_v17 = vld [vmem:[%s2314_s1 + $0x20] ss:$12 sps:$4 sm:$0xff]   ;;  %vm1515_vm1 = vmpackc.low %vm110_vm0, %vm110_vm0 }
  0x5e   :  { %118 = vadd.xlane.f32.xlu1 %v117_v8  ;;  %112 = vadd.xlane.f32.xlu0 %v111_v9  ;;  %v120_v10 = vsel %vm110_vm0, %v109_v5, 0.0  ;;  %v114_v11 = vsel %vm110_vm0, %v107_v7, 0.0  ;;  %v1564_v18 = vld [vmem:[%s2314_s1 + $0x34] ss:$12 sps:$4 sm:$0xff]   ;;  %v1567_v19 = vld [vmem:[%s2314_s1 + $0x38] ss:$12 sps:$4 sm:$0xff]  }
  0x5f   :  { %1431 = vmatpush3.bf16.msra.mxu1 %v1559_v14  ;;  %230 = vmatprep.subr.bf16.mxu0 %v1560_v15  ;;  %v1566_v20 = vld [vmem:[%s2314_s1 + $0x30] ss:$12 sps:$4 sm:$0xff]   ;;  %v1568_v22 = vld [vmem:[%s2314_s1 + $0x4c] ss:$12 sps:$4 sm:$0xff]   ;;  %v1570_v24 = vld [vmem:[%s2314_s1 + $0x48] ss:$12 sps:$4 sm:$0xff]  }
  0x60   :  { %1432 = vmatprep.subr.bf16.mxu1 %v1563_v17  ;;  %v1571_v23 = vld [vmem:[%s2314_s1 + $0x50] ss:$12 sps:$4 sm:$0xff]   ;;  %v2009_v25 = vld [vmem:[#allocation8 + $0x8] sm:$0xff]  ;;  %v334_v26 = vld [vmem:[#allocation8] sm:$0xff] }
  0x61   :  { %231 = vmatpush1.bf16.msra.mxu0 %v1562_v16  ;;  %v330_v27 = vld [vmem:[#allocation7] sm:$0xff]  ;;  %v2014_v28 = vld [vmem:[#allocation8 + $0x10] sm:$0xff]  ;;  %v331_v29 = vld [vmem:[#allocation7 + $0x8] sm:$0xff] }
  0x62   :  { %121 = vadd.xlane.f32.xlu1 %v120_v10  ;;  %115 = vadd.xlane.f32.xlu0 %v114_v11  ;;  %v2019_v30 = vld [vmem:[#allocation7 + $0x10] sm:$0xff]  ;;  %v2024_v31 = vld [vmem:[#allocation8 + $0x18] sm:$0xff]  ;;  %v394_v13 = vld [vmem:[#allocation10] sm:$0xff] }
  0x63   :  { %1433 = vmatpush3.bf16.msra.mxu1 %v1563_v17  ;;  %232 = vmatprep.subr.bf16.mxu0 %v1564_v18  ;;  %v2028_v32 = vld [vmem:[#allocation7 + $0x18] sm:$0xff] }
  0x64   :  { %1434 = vmatprep.subr.bf16.mxu1 %v1567_v19 }
  0x65   :  { %233 = vmatpush1.bf16.msra.mxu0 %v1566_v20 }
  0x66   :  { %234 = vmatprep.subr.bf16.mxu0 %v1568_v22 }
  0x67   :  { %1435 = vmatpush3.bf16.msra.mxu1 %v1567_v19 }
  0x68   :  { %1436 = vmatprep.subr.bf16.mxu1 %v1571_v23 }
  0x69   :  { %235 = vmatpush1.bf16.msra.mxu0 %v1570_v24 }
  0x6b   :  { %1437 = vmatpush3.bf16.msra.mxu1 %v1571_v23 }
  0x73   :  { %356 = vrot.lane.b32.xlu1 %v2009_v25, %s1817_s19 }
  0x77   :  { %374 = vrot.lane.b32.xlu1 %v330_v27, %s1817_s19 }
  0x78   :  { %354 = vrot.lane.b32.xlu0 %v334_v26, %s1817_s19 }
  0x7b   :  { %376 = vrot.lane.b32.xlu1 %v331_v29, %s1817_s19 }
  0x7c   :  { %358 = vrot.lane.b32.xlu0 %v2014_v28, %s1817_s19 }
  0x7f   :  { %360 = vrot.lane.b32.xlu1 %v2024_v31, %s1817_s19 }
  0x80   :  { %378 = vrot.lane.b32.xlu0 %v2019_v30, %s1817_s19 }
  0x83   :  { %380 = vrot.lane.b32.xlu1 %v2028_v32, %s1817_s19 }
  0xeb   :  { %v119_v33 = vpop.xlane.xlu1 %118  ;;  %v113_v34 = vpop.xlane.xlu0 %112 }
  0xec   :  { %v126_v35 = vmul.f32 0.015625, %v119_v33  ;;  %v124_v36 = vmul.f32 0.015625, %v113_v34 }
  0xee   :  { %v130_v37 = vadd.f32 1e-05, %v126_v35  ;;  %v128_v38 = vadd.f32 1e-05, %v124_v36 }
  0xef   :  { %v122_v39 = vpop.xlane.xlu1 %121  ;;  %v116_v40 = vpop.xlane.xlu0 %115 }
  0xf0   :  { %v127_v41 = vmul.f32 0.015625, %v122_v39  ;;  %v125_v42 = vmul.f32 0.015625, %v116_v40  ;;  %1596 = vrsqrt.f32 %v130_v37 }
  0xf1   :  { %1598 = vrsqrt.f32 %v128_v38 }
  0xf2   :  { %v131_v43 = vadd.f32 1e-05, %v127_v41  ;;  %v129_v44 = vadd.f32 1e-05, %v125_v42 }
  0xf3   :  { %v357_v55 = vpop.permute.xlu1 %356  ;;  %v355_v57 = vpop.permute.xlu0 %354 }
  0xf4   :  { %1600 = vrsqrt.f32 %v131_v43 }
  0xf5   :  { %1602 = vrsqrt.f32 %v129_v44 }
  0xf7   :  { %v375_v56 = vpop.permute.xlu1 %374  ;;  %v359_v59 = vpop.permute.xlu0 %358 }
  0xfa   :  { %v1597_v45 = vpop.eup %1596 }
  0xfb   :  { %v1599_v46 = vpop.eup %1598  ;;  %v138_v49 = vmul.f32 %v1597_v45, %v1952_v0  ;;  %v377_v58 = vpop.permute.xlu1 %376 }
  0xfc   :  { %v136_v51 = vmul.f32 %v1599_v46, %v1954_v1  ;;  %v379_v20 = vpop.permute.xlu0 %378 }
  0xfe   :  { %v1601_v47 = vpop.eup %1600 }
  0xff   :  { %v1603_v48 = vpop.eup %1602  ;;  %v139_v50 = vmul.f32 %v1601_v47, %v1956_v2  ;;  %v361_v60 = vpop.permute.xlu1 %360 }
 0x100   :  { %v137_v52 = vmul.f32 %v1603_v48, %v1964_v6 }
 0x101   :  { %v141_v53 = vpack.c.bf16 %v139_v50, %v138_v49 }
 0x102   :  { %v140_v54 = vpack.c.bf16 %v137_v52, %v136_v51 }
 0x103   :  { %v381_v24 = vpop.permute.xlu1 %380 }
 0x104   :  { %1328 = vmatmul.mubr.msk.bf16.vlgmr.msra.gmra.mrb[0].mxu0 %vm110_vm0, %v140_v54  ;;  %1438 = vmatprep.mubr.msk.bf16.mxu1 %vm110_vm0, %v140_v54  ;;  %v395_v54 = vld [vmem:[#allocation10 + $0x8] sm:$0xff] }
 0x105   :  { %1439 = vmatmul.mubr.msk.bf16.vlgmr.msra.gmra.mrb[0].mxu1 %vm110_vm0, %v141_v53  ;;  %270 = vmatprep.mubr.bf16.mxu0 %v1825_v21 }
 0x10c   :  { %1329 = vmatmul.mubr.msk.bf16.gmra.mrb[4].mxu0 %vm110_vm0, %v141_v53 }
 0x1d7   :  { %v262_v61 = vpop.f32.mrb[0].mxu0 }
 0x1d8   :  { %v2041_v62 = vpop.f32.mrb[1].mxu0  ;;  %v1440_v63 = vpop.f32.mrb[0].mxu1  ;;  %v338_v5 = vmul.f32 %v334_v26, %v262_v61  ;;  %v366_v11 = vmul.f32 %v355_v57, %v262_v61 }
 0x1d9   :  { %v266_v3 = vpop.f32.mrb[2].mxu0  ;;  %v315_v4 = vpop.f32.mrb[1].mxu1  ;;  %v388_v34 = vmul.f32 %v1440_v63, %v379_v20 }
 0x1da   :  { %v342_v7 = vmul.f32 %v330_v27, %v315_v4  ;;  %v386_v8 = vmul.f32 %v375_v56, %v315_v4  ;;  %v2043_v9 = vpop.f32.mrb[3].mxu0  ;;  %v1441_v10 = vpop.f32.mrb[2].mxu1  ;;  %v339_v12 = vmul.f32 %v2009_v25, %v266_v3  ;;  %v367_v16 = vmul.f32 %v357_v55, %v266_v3  ;;  %v396_v55 = vld [vmem:[#allocation10 + $0x10] sm:$0xff] }
 0x1db   :  { %v1526_v14 = vpack.c.bf16 %v2043_v9, %v2041_v62  ;;  %v318_v15 = vpop.f32.mrb[3].mxu1  ;;  %v344_v25 = vmul.f32 %v1440_v63, %v2019_v30  ;;  %v389_v38 = vmul.f32 %v1441_v10, %v381_v24  ;;  %v399_v63 = vld [vmem:[#allocation10 + $0x28] sm:$0xff]  ;;  %v400_v3 = vld [vmem:[#allocation10 + $0x30] sm:$0xff] }
 0x1dc   :  { %v346_v17 = vadd.f32 %v342_v7, %v338_v5  ;;  %v343_v18 = vmul.f32 %v331_v29, %v318_v15  ;;  %v387_v19 = vmul.f32 %v377_v58, %v318_v15  ;;  %v390_v22 = vadd.f32 %v386_v8, %v366_v11  ;;  %v397_v58 = vld [vmem:[#allocation10 + $0x18] sm:$0xff]  ;;  %v559_v11 = vld [vmem:[%s2321_s8] sm:$0xff] }
 0x1dd   :  { %1527 = vmatprep.subr.bf16.mxu1 %v1526_v14  ;;  %v345_v29 = vmul.f32 %v1441_v10, %v2028_v32  ;;  %v401_v7 = vld [vmem:[#allocation10 + $0x38] sm:$0xff]  ;;  %v560_v10 = vld [vmem:[%s2321_s8 + $0x8] sm:$0xff] }
 0x1de   :  { %v402_v23 = vmul.f32 %v394_v13, %v346_v17  ;;  %v347_v26 = vadd.f32 %v343_v18, %v339_v12  ;;  %1529 = vmatpush3.bf16.msra.mxu1 %v1526_v14  ;;  %v391_v27 = vadd.f32 %v387_v19, %v367_v16  ;;  %v562_v16 = vld [vmem:[%s2321_s8 + $0x18] sm:$0xff] }
 0x1df   :  { %v272_v33 = vpop.f32.mrb[4].mxu0 }
 0x1e0   :  { %v340_v35 = vmul.f32 %v2014_v28, %v272_v33  ;;  %v368_v36 = vmul.f32 %v359_v59, %v272_v33  ;;  %v2050_v37 = vpop.f32.mrb[5].mxu0  ;;  %1450 = vmatprep.mubr.msk.f32.mxu0 %vm110_vm0, %v402_v23  ;;  %v1546_v40 = vpack.i.bf16 %v391_v27, %v390_v22  ;;  %v403_v56 = vmul.f32 %v395_v54, %v347_v26  ;;  %v398_v59 = vld [vmem:[#allocation10 + $0x20] sm:$0xff]  ;;  %v564_v33 = vld [vmem:[%s2321_s8 + $0x28] sm:$0xff] }
 0x1e1   :  { %v276_v39 = vpop.f32.mrb[6].mxu0  ;;  %v406_v61 = vmul.f32 %v398_v59, %v346_v17  ;;  %v407_v4 = vmul.f32 %v399_v63, %v347_v26  ;;  %v561_v17 = vld [vmem:[%s2321_s8 + $0x10] sm:$0xff] }
 0x1e2   :  { %v348_v41 = vadd.f32 %v344_v25, %v340_v35  ;;  %v341_v42 = vmul.f32 %v2024_v31, %v276_v39  ;;  %v369_v43 = vmul.f32 %v361_v60, %v276_v39  ;;  %v2055_v44 = vpop.f32.mrb[7].mxu0  ;;  %v392_v30 = vadd.f32 %v388_v34, %v368_v36  ;;  %1547 = vrot.lane.b32.xlu0 %v1546_v40, %s1817_s19  ;;  %v563_v25 = vld [vmem:[%s2321_s8 + $0x20] sm:$0xff]  ;;  %v566_v40 = vld [vmem:[%s2321_s8 + $0x38] sm:$0xff] }
 0x1e3   :  { %v1530_v28 = vpack.c.bf16 %v2055_v44, %v2050_v37 }
 0x1e4   :  { %v349_v45 = vadd.f32 %v345_v29, %v341_v42  ;;  %v393_v46 = vadd.f32 %v389_v38, %v369_v43  ;;  %v404_v57 = vmul.f32 %v396_v55, %v348_v41  ;;  %v408_v5 = vmul.f32 %v400_v3, %v348_v41  ;;  %v565_v42 = vld [vmem:[%s2321_s8 + $0x30] sm:$0xff]  ;;  %s1826_s8 = smov 96  }
 0x1e5   :  { %1531 = vmatprep.subr.bf16.mxu1 %v1530_v28 }
 0x1e6   :  { %1533 = vmatpush3.bf16.msra.mxu1 %v1530_v28  ;;  %v1551_v32 = vpack.i.bf16 %v393_v46, %v392_v30  ;;  %v405_v60 = vmul.f32 %v397_v58, %v349_v45  ;;  %v409_v8 = vmul.f32 %v401_v7, %v349_v45 }
 0x1e8   :  { %1552 = vrot.lane.b32.xlu1 %v1551_v32, %s1817_s19 }
 0x254   :  { %v1548_v47 = vpop.permute.xlu0 %1547 }
 0x255   :  { %v1550_v48 = vunpack.i.h.bf16 %v1548_v47  ;;  %v1549_v49 = vunpack.i.l.bf16 %v1548_v47 }
 0x257   :  { %v1514_v31 = vpack.c.bf16 %v1550_v48, %v1549_v49 }
 0x259   :  { %1516 = vmatprep.subr.msk.bf16.mxu0 %vm1515_vm1, %v1514_v31 }
 0x25a   :  { %v1553_v50 = vpop.permute.xlu1 %1552  ;;  %1519 = vmatpush3.bf16.xpose.msk.msra.mxu0 %vm1515_vm1, %v1514_v31 }
 0x25b   :  { %v1555_v51 = vunpack.i.h.bf16 %v1553_v50  ;;  %v1554_v52 = vunpack.i.l.bf16 %v1553_v50 }
 0x25d   :  { %v1520_v53 = vpack.c.bf16 %v1555_v51, %v1554_v52 }
 0x25f   :  { %1522 = vmatprep.subr.msk.bf16.mxu0 %vm1515_vm1, %v1520_v53 }
 0x262   :  { %1525 = vmatpush3.bf16.xpose.msk.msra.mxu0 %vm1515_vm1, %v1520_v53 }
 0x269   :  { %1451 = vmatmul.mubr.msk.f32.vlgmr.msra.gmra.mrb[8].mxu0 %vm110_vm0, %v403_v56 }
 0x26a   :  { %1453 = vmatprep.mubr.msk.f32.mxu0 %vm110_vm0, %v404_v57 }
 0x26d   :  { %1454 = vmatmul.mubr.msk.f32.gmra.mrb[10].mxu0 %vm110_vm0, %v405_v60 }
 0x26e   :  { %1456 = vmatprep.mubr.msk.f32.mxu0 %vm110_vm0, %v406_v61 }
 0x271   :  { %1457 = vmatmul.mubr.msk.f32.gmra.mrb[12].mxu0 %vm110_vm0, %v407_v4 }
 0x272   :  { %1459 = vmatprep.mubr.msk.f32.mxu0 %vm110_vm0, %v408_v5 }
 0x275   :  { %1460 = vmatmul.mubr.msk.f32.gmra.mrb[14].mxu0 %vm110_vm0, %v409_v8 }
 0x276   :  { %1121 = vmatprep.mubr.bf16.mxu0 %v1825_v21 }
 0x33c   :  { %v1452_v12 = vpop.f32.mrb[8].mxu0 }
 0x33d   :  { %v2077_v13 = vmul.f32 %v1452_v12, %v560_v10  ;;  %v520_v14 = vpop.f32.mrb[9].mxu0 }
 0x33e   :  { %v2079_v15 = vmul.f32 %v559_v11, %v520_v14 }
 0x33f   :  { %v576_v18 = vand.u32 2147483647, %v2077_v13 }
 0x340   :  { %v1455_v19 = vpop.f32.mrb[10].mxu0  ;;  %v575_v20 = vand.u32 2147483647, %v2079_v15 }
 0x341   :  { %v2089_v22 = vmul.f32 %v1455_v19, %v562_v16  ;;  %v530_v23 = vpop.f32.mrb[11].mxu0  ;;  %v587_v24 = vsel %vm583_vm2, %v576_v18, 0.0 }
 0x342   :  { %v2092_v26 = vmul.f32 %v561_v17, %v530_v23  ;;  %588 = vadd.xlane.f32.xlu1 %v587_v24  ;;  %v584_v27 = vsel %vm583_vm2, %v575_v20, 0.0 }
 0x343   :  { %585 = vadd.xlane.f32.xlu0 %v584_v27  ;;  %v578_v34 = vand.u32 2147483647, %v2089_v22 }
 0x344   :  { %v1458_v35 = vpop.f32.mrb[12].mxu0  ;;  %v577_v41 = vand.u32 2147483647, %v2092_v26 }
 0x345   :  { %v2102_v36 = vmul.f32 %v1458_v35, %v564_v33  ;;  %v540_v29 = vpop.f32.mrb[13].mxu0  ;;  %v593_v38 = vsel %vm583_vm2, %v578_v34, 0.0 }
 0x346   :  { %v2105_v39 = vmul.f32 %v563_v25, %v540_v29  ;;  %v590_v47 = vsel %vm583_vm2, %v577_v41, 0.0 }
 0x347   :  { %594 = vadd.xlane.f32.xlu0 %v593_v38  ;;  %v580_v43 = vand.u32 2147483647, %v2102_v36 }
 0x348   :  { %v1461_v30 = vpop.f32.mrb[14].mxu0  ;;  %v579_v48 = vand.u32 2147483647, %v2105_v39 }
 0x349   :  { %v2115_v28 = vmul.f32 %v1461_v30, %v566_v40  ;;  %v550_v45 = vpop.f32.mrb[15].mxu0  ;;  %v599_v46 = vsel %vm583_vm2, %v580_v43, 0.0 }
 0x34a   :  { %v2118_v32 = vmul.f32 %v565_v42, %v550_v45  ;;  %600 = vadd.xlane.f32.xlu1 %v599_v46  ;;  %v596_v50 = vsel %vm583_vm2, %v579_v48, 0.0 }
 0x34b   :  { %591 = vadd.xlane.f32.xlu0 %v590_v47  ;;  %v582_v49 = vand.u32 2147483647, %v2115_v28 }
 0x34c   :  { %v581_v51 = vand.u32 2147483647, %v2118_v32 }
 0x34d   :  { %v605_v31 = vsel %vm583_vm2, %v582_v49, 0.0 }
 0x34e   :  { %606 = vadd.xlane.f32.xlu1 %v605_v31  ;;  %v602_v52 = vsel %vm583_vm2, %v581_v51, 0.0 }
 0x34f   :  { %597 = vadd.xlane.f32.xlu0 %v596_v50 }
 0x353   :  { %603 = vadd.xlane.f32.xlu0 %v602_v52 }
 0x3cf   :  { %v589_v53 = vpop.xlane.xlu1 %588 }
 0x3d0   :  { %v609_v54 = vmax.f32 %v589_v53, 1.0  ;;  %v586_v55 = vpop.xlane.xlu0 %585 }
 0x3d1   :  { %v608_v56 = vmax.f32 %v586_v55, 1.0 }
 0x3d2   :  { %v617_v57 = vmin.f32 %v609_v54, 50000.0 }
 0x3d3   :  { %v616_v58 = vmin.f32 %v608_v56, 50000.0 }
 0x3d4   :  { %1604 = vrcp.f32 %v617_v57  ;;  %v595_v59 = vpop.xlane.xlu0 %594 }
 0x3d5   :  { %1606 = vrcp.f32 %v616_v58  ;;  %v611_v60 = vmax.f32 %v595_v59, 1.0 }
 0x3d7   :  { %v601_v61 = vpop.xlane.xlu1 %600  ;;  %v619_v63 = vmin.f32 %v611_v60, 50000.0 }
 0x3d8   :  { %v613_v3 = vmax.f32 %v601_v61, 1.0  ;;  %v592_v4 = vpop.xlane.xlu0 %591 }
 0x3d9   :  { %v610_v5 = vmax.f32 %v592_v4, 1.0  ;;  %1608 = vrcp.f32 %v619_v63 }
 0x3da   :  { %v621_v10 = vmin.f32 %v613_v3, 50000.0 }
 0x3db   :  { %v618_v7 = vmin.f32 %v610_v5, 50000.0  ;;  %v607_v8 = vpop.xlane.xlu1 %606 }
 0x3dc   :  { %v615_v11 = vmax.f32 %v607_v8, 1.0  ;;  %v598_v12 = vpop.xlane.xlu0 %597 }
 0x3dd   :  { %1610 = vrcp.f32 %v618_v7  ;;  %v612_v14 = vmax.f32 %v598_v12, 1.0 }
 0x3de   :  { %v1605_v16 = vpop.eup %1604  ;;  %1612 = vrcp.f32 %v621_v10  ;;  %v623_v19 = vmin.f32 %v615_v11, 50000.0 }
 0x3df   :  { %v1607_v17 = vpop.eup %1606  ;;  %v620_v18 = vmin.f32 %v612_v14, 50000.0  ;;  %v633_v27 = vmul.f32 %v1605_v16, %v2077_v13 }
 0x3e0   :  { %v604_v20 = vpop.xlane.xlu0 %603  ;;  %v632_v23 = vmul.f32 %v1607_v17, %v2079_v15 }
 0x3e1   :  { %1614 = vrcp.f32 %v620_v18  ;;  %v614_v24 = vmax.f32 %v604_v20, 1.0 }
 0x3e2   :  { %1470 = vmatprep.mubr.msk.f32.mxu1 %vm583_vm2, %v632_v23  ;;  %1616 = vrcp.f32 %v623_v19 }
 0x3e3   :  { %v622_v33 = vmin.f32 %v614_v24, 50000.0  ;;  %1471 = vmatmul.mubr.msk.f32.vlgmr.msra.gmra.mrb[4].mxu1 %vm583_vm2, %v633_v27  ;;  %v1609_v25 = vpop.eup %1608 }
 0x3e4   :  { %v635_v29 = vmul.f32 %v1609_v25, %v2089_v22 }
 0x3e5   :  { %1618 = vrcp.f32 %v622_v33 }
 0x3e7   :  { %v1611_v34 = vpop.eup %1610 }
 0x3e8   :  { %v634_v35 = vmul.f32 %v1611_v34, %v2092_v26  ;;  %v1613_v38 = vpop.eup %1612 }
 0x3e9   :  { %v637_v40 = vmul.f32 %v1613_v38, %v2102_v36 }
 0x3ea   :  { %1473 = vmatprep.mubr.msk.f32.mxu1 %vm583_vm2, %v634_v35 }
 0x3eb   :  { %v1615_v15 = vpop.eup %1614  ;;  %1474 = vmatmul.mubr.msk.f32.gmra.mrb[6].mxu1 %vm583_vm2, %v635_v29 }
 0x3ec   :  { %v636_v13 = vmul.f32 %v1615_v15, %v2105_v39  ;;  %v1617_v41 = vpop.eup %1616 }
 0x3ed   :  { %v639_v22 = vmul.f32 %v1617_v41, %v2115_v28 }
 0x3ee   :  { %1476 = vmatprep.mubr.msk.f32.mxu1 %vm583_vm2, %v636_v13 }
 0x3ef   :  { %v1619_v42 = vpop.eup %1618  ;;  %1477 = vmatmul.mubr.msk.f32.gmra.mrb[8].mxu1 %vm583_vm2, %v637_v40 }
 0x3f0   :  { %v638_v26 = vmul.f32 %v1619_v42, %v2118_v32 }
 0x3f2   :  { %1479 = vmatprep.mubr.msk.f32.mxu1 %vm583_vm2, %v638_v26 }
 0x3f3   :  { %1480 = vmatmul.mubr.msk.f32.gmra.mrb[10].mxu1 %vm583_vm2, %v639_v22 }
 0x4b6   :  { %v2143_v43 = vpop.f32.mrb[4].mxu1 }
 0x4b7   :  { %v2145_v30 = vpop.f32.mrb[5].mxu1  ;;  %v770_v54 = vmul.f32 %v2143_v43, %v2143_v43 }
 0x4b8   :  { %v769_v50 = vmul.f32 %v2145_v30, %v2145_v30 }
 0x4b9   :  { %v776_v56 = vsel %vm583_vm2, %v770_v54, 0.0 }
 0x4ba   :  { %v773_v52 = vsel %vm583_vm2, %v769_v50, 0.0 }
 0x4be   :  { %v2147_v39 = vpop.f32.mrb[6].mxu1 }
 0x4bf   :  { %v2149_v36 = vpop.f32.mrb[7].mxu1  ;;  %v772_v55 = vmul.f32 %v2147_v39, %v2147_v39 }
 0x4c0   :  { %v771_v51 = vmul.f32 %v2149_v36, %v2149_v36 }
 0x4c1   :  { %v782_v57 = vsel %vm583_vm2, %v772_v55, 0.0  ;;  %v1572_v55 = vld [vmem:[#allocation5] sm:$0xff]  }
 0x4c2   :  { %v2151_v45 = vpop.f32.mrb[8].mxu1  ;;  %v779_v53 = vsel %vm583_vm2, %v771_v51, 0.0  ;;  %1482 = vmatprep.subr.bf16.mxu1 %v1572_v55 }
 0x4c3   :  { %v803_v46 = vmul.f32 %v2151_v45, %v2151_v45  ;;  %v2155_v32 = vpop.f32.mrb[9].mxu1  ;;  %1483 = vmatpush3.bf16.msra.mxu1 %v1572_v55  ;;  %v1579_v55 = vld [vmem:[%s2316_s3 + $0x10] ss:$8 sps:$4 sm:$0xff]  }
 0x4c4   :  { %v802_v28 = vmul.f32 %v2155_v32, %v2155_v32 }
 0x4c5   :  { %812 = vrot.lane.b32.xlu1 %v803_v46, %s1826_s8 }
 0x4c6   :  { %810 = vrot.lane.b32.xlu0 %v802_v28, %s1826_s8  ;;  %v2159_v47 = vpop.f32.mrb[10].mxu1 }
 0x4c7   :  { %v2161_v48 = vpop.f32.mrb[11].mxu1  ;;  %v805_v31 = vmul.f32 %v2159_v47, %v2159_v47 }
 0x4c8   :  { %v804_v49 = vmul.f32 %v2161_v48, %v2161_v48 }
 0x4ca   :  { %814 = vrot.lane.b32.xlu1 %v804_v49, %s1826_s8 }
 0x4ce   :  { %816 = vrot.lane.b32.xlu1 %v805_v31, %s1826_s8 }
 0x4e5   :  { %774 = vadd.xlane.f32.xlu0 %v773_v52 }
 0x4e9   :  { %780 = vadd.xlane.f32.xlu0 %v779_v53 }
 0x4f2   :  { %777 = vadd.xlane.f32.xlu1 %v776_v56  ;;  %v1573_v56 = vld [vmem:[#allocation5 + $0x8] sm:$0xff]  }
 0x4f3   :  { %1484 = vmatprep.subr.bf16.mxu1 %v1573_v56 }
 0x4f4   :  { %1485 = vmatpush3.bf16.msra.mxu1 %v1573_v56  ;;  %v1584_v56 = vld [vmem:[%s2316_s3 + $0x24] ss:$8 sps:$4 sm:$0xff]  }
 0x4f6   :  { %783 = vadd.xlane.f32.xlu1 %v782_v57 }
 0x537   :  { %v813_v58 = vpop.permute.xlu1 %812 }
 0x538   :  { %v825_v59 = vsel %vm583_vm2, %v813_v58, 0.0  ;;  %v811_v60 = vpop.permute.xlu0 %810 }
 0x539   :  { %826 = vadd.xlane.f32.xlu0 %v825_v59  ;;  %v822_v63 = vsel %vm583_vm2, %v811_v60, 0.0 }
 0x53c   :  { %v815_v61 = vpop.permute.xlu1 %814 }
 0x53d   :  { %823 = vadd.xlane.f32.xlu0 %v822_v63  ;;  %v828_v4 = vsel %vm583_vm2, %v815_v61, 0.0 }
 0x540   :  { %v817_v3 = vpop.permute.xlu1 %816 }
 0x541   :  { %829 = vadd.xlane.f32.xlu0 %v828_v4  ;;  %v831_v5 = vsel %vm583_vm2, %v817_v3, 0.0 }
 0x542   :  { %832 = vadd.xlane.f32.xlu1 %v831_v5 }
 0x572   :  { %v775_v7 = vpop.xlane.xlu0 %774 }
 0x573   :  { %v786_v12 = vmul.f32 0.03125, %v775_v7 }
 0x575   :  { %v790_v19 = vadd.f32 1e-05, %v786_v12  ;;  %v1575_v12 = vld [vmem:[#allocation5 + $0x18] sm:$0xff]  }
 0x576   :  { %v781_v11 = vpop.xlane.xlu0 %780 }
 0x577   :  { %v788_v20 = vmul.f32 0.03125, %v781_v11  ;;  %v1574_v11 = vld [vmem:[#allocation5 + $0x10] sm:$0xff]  }
 0x578   :  { %1486 = vmatprep.subr.bf16.mxu1 %v1574_v11 }
 0x579   :  { %v792_v25 = vadd.f32 1e-05, %v788_v20  ;;  %1487 = vmatpush3.bf16.msra.mxu1 %v1574_v11 }
 0x57a   :  { %1488 = vmatprep.subr.bf16.mxu1 %v1575_v12 }
 0x57d   :  { %1489 = vmatpush3.bf16.msra.mxu1 %v1575_v12 }
 0x57f   :  { %v778_v8 = vpop.xlane.xlu1 %777 }
 0x580   :  { %v787_v10 = vmul.f32 0.03125, %v778_v8 }
 0x582   :  { %v791_v14 = vadd.f32 1e-05, %v787_v10 }
 0x583   :  { %v784_v17 = vpop.xlane.xlu1 %783 }
 0x584   :  { %1620 = vrsqrt.f32 %v791_v14  ;;  %v789_v24 = vmul.f32 0.03125, %v784_v17 }
 0x586   :  { %v793_v35 = vadd.f32 1e-05, %v789_v24 }
 0x58e   :  { %v1621_v42 = vpop.eup %1620 }
 0x58f   :  { %v799_v22 = vmul.f32 %v1621_v42, %v2143_v43 }
 0x5c6   :  { %v827_v16 = vpop.xlane.xlu0 %826 }
 0x5c7   :  { %v835_v18 = vmul.f32 0.03125, %v827_v16 }
 0x5c9   :  { %v839_v23 = vadd.f32 1e-05, %v835_v18 }
 0x5ca   :  { %v824_v27 = vpop.xlane.xlu0 %823 }
 0x5cb   :  { %1622 = vrsqrt.f32 %v839_v23  ;;  %v834_v33 = vmul.f32 0.03125, %v824_v27 }
 0x5cc   :  { %1624 = vrsqrt.f32 %v790_v19 }
 0x5cd   :  { %v838_v34 = vadd.f32 1e-05, %v834_v33 }
 0x5ce   :  { %v830_v29 = vpop.xlane.xlu0 %829 }
 0x5cf   :  { %1626 = vrsqrt.f32 %v838_v34  ;;  %v836_v38 = vmul.f32 0.03125, %v830_v29  ;;  %v833_v15 = vpop.xlane.xlu1 %832 }
 0x5d0   :  { %v837_v13 = vmul.f32 0.03125, %v833_v15  ;;  %1628 = vrsqrt.f32 %v792_v25 }
 0x5d1   :  { %v840_v40 = vadd.f32 1e-05, %v836_v38  ;;  %1630 = vrsqrt.f32 %v793_v35 }
 0x5d2   :  { %v841_v41 = vadd.f32 1e-05, %v837_v13 }
 0x5d3   :  { %1632 = vrsqrt.f32 %v840_v40 }
 0x5d4   :  { %1634 = vrsqrt.f32 %v841_v41 }
 0x5d5   :  { %v1623_v26 = vpop.eup %1622 }
 0x5d6   :  { %v847_v46 = vmul.f32 %v1623_v26, %v2151_v45  ;;  %v1625_v28 = vpop.eup %1624 }
 0x5d7   :  { %v798_v50 = vmul.f32 %v1625_v28, %v2145_v30 }
 0x5d8   :  { %v851_v49 = vsel %vm583_vm2, %v799_v22, %v847_v46 }
 0x5d9   :  { %v1627_v31 = vpop.eup %1626  ;;  %888 = vrot.lane.b32.xlu1 %v851_v49, %s1817_s19 }
 0x5da   :  { %v846_v51 = vmul.f32 %v1627_v31, %v2155_v32  ;;  %v1629_v52 = vpop.eup %1628 }
 0x5db   :  { %v1631_v53 = vpop.eup %1630  ;;  %v800_v45 = vmul.f32 %v1629_v52, %v2149_v36  ;;  %v1352_v36 = vmul.f32 -1.442695, %v2041_v62  ;;  %v1578_v52 = vld [vmem:[%s2316_s3 + $0x4] ss:$8 sps:$4 sm:$0xff]  }
 0x5dc   :  { %v850_v54 = vsel %vm583_vm2, %v798_v50, %v846_v51  ;;  %v801_v59 = vmul.f32 %v1631_v53, %v2147_v39  ;;  %v1354_v39 = vmul.f32 -1.442695, %v2050_v37  ;;  %v1576_v53 = vld [vmem:[%s2316_s3] ss:$8 sps:$4 sm:$0xff]   ;;  %1089 = vmatprep.subr.bf16.mxu0 %v1578_v52 }
 0x5dd   :  { %v1633_v57 = vpop.eup %1632  ;;  %886 = vrot.lane.b32.xlu0 %v850_v54, %s1817_s19  ;;  %1636 = vpow2.f32 %v1352_v36  ;;  %1090 = vmatpush1.bf16.msra.mxu0 %v1576_v53  ;;  %v1581_v54 = vld [vmem:[%s2316_s3 + $0x14] ss:$8 sps:$4 sm:$0xff]  }
 0x5de   :  { %v1635_v43 = vpop.eup %1634  ;;  %v848_v58 = vmul.f32 %v1633_v57, %v2161_v48  ;;  %v1353_v48 = vmul.f32 -1.442695, %v2043_v9  ;;  %1091 = vmatprep.subr.bf16.mxu0 %v1581_v54  ;;  %v1582_v57 = vld [vmem:[%s2316_s3 + $0x20] ss:$8 sps:$4 sm:$0xff]  }
 0x5df   :  { %v849_v30 = vmul.f32 %v1635_v43, %v2159_v47  ;;  %v1355_v47 = vmul.f32 -1.442695, %v2055_v44  ;;  %v1587_v43 = vld [vmem:[%s2316_s3 + $0x34] ss:$8 sps:$4 sm:$0xff]  }
 0x5e0   :  { %v852_v32 = vsel %vm583_vm2, %v800_v45, %v848_v58  ;;  %1638 = vpow2.f32 %v1353_v48  ;;  %v1585_v45 = vld [vmem:[%s2316_s3 + $0x30] ss:$8 sps:$4 sm:$0xff]  }
 0x5e1   :  { %890 = vrot.lane.b32.xlu1 %v852_v32, %s1817_s19  ;;  %v853_v60 = vsel %vm583_vm2, %v801_v59, %v849_v30  ;;  %1640 = vpow2.f32 %v1354_v39  ;;  %1092 = vmatpush1.bf16.msra.mxu0 %v1579_v55 }
 0x5e2   :  { %1642 = vpow2.f32 %v1355_v47  ;;  %1093 = vmatprep.subr.bf16.mxu0 %v1584_v56 }
 0x5e5   :  { %892 = vrot.lane.b32.xlu1 %v853_v60, %s1817_s19  ;;  %1094 = vmatpush1.bf16.msra.mxu0 %v1582_v57 }
 0x5e6   :  { %1095 = vmatprep.subr.bf16.mxu0 %v1587_v43 }
 0x5e7   :  { %v1637_v61 = vpop.eup %1636 }
 0x5e8   :  { %v866_v3 = vadd.f32 1.0, %v1637_v61 }
 0x5e9   :  { %1096 = vmatpush1.bf16.msra.mxu0 %v1585_v45 }
 0x5ea   :  { %v1639_v63 = vpop.eup %1638  ;;  %1644 = vrcp.f32 %v866_v3 }
 0x5eb   :  { %v867_v4 = vadd.f32 1.0, %v1639_v63  ;;  %v1641_v5 = vpop.eup %1640 }
 0x5ec   :  { %v1643_v7 = vpop.eup %1642  ;;  %v868_v8 = vadd.f32 1.0, %v1641_v5 }
 0x5ed   :  { %1646 = vrcp.f32 %v867_v4  ;;  %v869_v10 = vadd.f32 1.0, %v1643_v7 }
 0x5ee   :  { %1648 = vrcp.f32 %v868_v8 }
 0x5ef   :  { %1650 = vrcp.f32 %v869_v10 }
 0x5f4   :  { %v1645_v14 = vpop.eup %1644 }
 0x5f5   :  { %v878_v19 = vmul.f32 %v1645_v14, %v2041_v62 }
 0x5f7   :  { %v1647_v16 = vpop.eup %1646 }
 0x5f8   :  { %v879_v18 = vmul.f32 %v1647_v16, %v2043_v9  ;;  %v1649_v27 = vpop.eup %1648 }
 0x5f9   :  { %v1651_v25 = vpop.eup %1650  ;;  %v880_v35 = vmul.f32 %v1649_v27, %v2050_v37  ;;  %v1594_v27 = vld [vmem:[%s2317_s4 + $0x30] sm:$0xff]  }
 0x5fa   :  { %v881_v29 = vmul.f32 %v1651_v25, %v2055_v44 }
 0x64b   :  { %v889_v17 = vpop.permute.xlu1 %888 }
 0x64c   :  { %v899_v23 = vmul.f32 %v889_v17, %v879_v18  ;;  %v1588_v18 = vld [vmem:[%s2317_s4] sm:$0xff]  }
 0x64d   :  { %1494 = vmatprep.subr.bf16.mxu1 %v1588_v18 }
 0x64f   :  { %v887_v20 = vpop.permute.xlu0 %886 }
 0x650   :  { %v898_v24 = vmul.f32 %v887_v20, %v878_v19  ;;  %v1589_v19 = vld [vmem:[%s2317_s4 + $0x8] sm:$0xff]   ;;  %v1591_v20 = vld [vmem:[%s2317_s4 + $0x18] sm:$0xff]  }
 0x652   :  { %v902_v33 = vpack.c.bf16 %v899_v23, %v898_v24  ;;  %v1592_v23 = vld [vmem:[%s2317_s4 + $0x20] sm:$0xff]   ;;  %v1593_v24 = vld [vmem:[%s2317_s4 + $0x28] sm:$0xff]  }
 0x653   :  { %v891_v34 = vpop.permute.xlu1 %890 }
 0x654   :  { %914 = vrot.lane.b32.xlu0 %v902_v33, %s1817_s19  ;;  %v900_v15 = vmul.f32 %v891_v34, %v880_v35  ;;  %v1595_v33 = vld [vmem:[%s2317_s4 + $0x38] sm:$0xff]  }
 0x657   :  { %v893_v38 = vpop.permute.xlu1 %892 }
 0x658   :  { %v901_v13 = vmul.f32 %v893_v38, %v881_v29 }
 0x65a   :  { %v903_v40 = vpack.c.bf16 %v901_v13, %v900_v15 }
 0x65c   :  { %916 = vrot.lane.b32.xlu1 %v903_v40, %s1817_s19 }
 0x6c6   :  { %v915_v62 = vpop.permute.xlu0 %914 }
 0x6c7   :  { %1490 = vmatprep.mubr.msk.bf16.mxu1 %vm110_vm0, %v915_v62 }
 0x6ce   :  { %v917_v9 = vpop.permute.xlu1 %916 }
 0x6cf   :  { %1491 = vmatmul.mubr.msk.bf16.vlgmr.msra.gmra.mrb[12].mxu1 %vm110_vm0, %v917_v9 }
 0x6d0   :  { %1495 = vmatpush3.bf16.msra.mxu1 %v1588_v18 }
 0x6d1   :  { %1496 = vmatprep.subr.bf16.mxu1 %v1589_v19 }
 0x6d4   :  { %1497 = vmatpush3.bf16.msra.mxu1 %v1589_v19 }
 0x7a2   :  { %v1492_v41 = vpop.f32.mrb[12].mxu1 }
 0x7a3   :  { %v982_v42 = vpop.f32.mrb[13].mxu1  ;;  %v2212_v26 = vadd.f32 %v1492_v41, %v1952_v0 }
 0x7a4   :  { %v2215_v37 = vadd.f32 %v982_v42, %v1954_v1  ;;  %v1493_v44 = vpop.f32.mrb[14].mxu1 }
 0x7a5   :  { %v985_v22 = vpop.f32.mrb[15].mxu1  ;;  %v2223_v49 = vadd.f32 %v1493_v44, %v1956_v2  ;;  %v1003_v1 = vmul.f32 %v2212_v26, %v2212_v26 }
 0x7a6   :  { %v2218_v46 = vadd.f32 %v985_v22, %v1964_v6  ;;  %v1001_v28 = vmul.f32 %v2215_v37, %v2215_v37 }
 0x7a7   :  { %v1011_v6 = vsel %vm110_vm0, %v1003_v1, 0.0  ;;  %v1004_v51 = vmul.f32 %v2223_v49, %v2223_v49 }
 0x7a8   :  { %v1005_v31 = vsel %vm110_vm0, %v1001_v28, 0.0  ;;  %v1002_v0 = vmul.f32 %v2218_v46, %v2218_v46 }
 0x7a9   :  { %1006 = vadd.xlane.f32.xlu0 %v1005_v31  ;;  %v1014_v2 = vsel %vm110_vm0, %v1004_v51, 0.0 }
 0x7aa   :  { %v1008_v50 = vsel %vm110_vm0, %v1002_v0, 0.0 }
 0x7ab   :  { %1009 = vadd.xlane.f32.xlu1 %v1008_v50 }
 0x7ad   :  { %1012 = vadd.xlane.f32.xlu0 %v1011_v6 }
 0x7b1   :  { %1015 = vadd.xlane.f32.xlu0 %v1014_v2 }
 0x836   :  { %v1007_v58 = vpop.xlane.xlu0 %1006 }
 0x837   :  { %v1017_v59 = vmul.f32 0.015625, %v1007_v58 }
 0x838   :  { %v1010_v30 = vpop.xlane.xlu1 %1009 }
 0x839   :  { %v1021_v32 = vadd.f32 1e-05, %v1017_v59  ;;  %v1018_v60 = vmul.f32 0.015625, %v1010_v30 }
 0x83a   :  { %v1013_v36 = vpop.xlane.xlu0 %1012 }
 0x83b   :  { %1652 = vrsqrt.f32 %v1021_v32  ;;  %v1022_v48 = vadd.f32 1e-05, %v1018_v60  ;;  %v1019_v39 = vmul.f32 0.015625, %v1013_v36 }
 0x83d   :  { %1654 = vrsqrt.f32 %v1022_v48  ;;  %v1023_v47 = vadd.f32 1e-05, %v1019_v39 }
 0x83e   :  { %v1016_v61 = vpop.xlane.xlu0 %1015 }
 0x83f   :  { %v1020_v63 = vmul.f32 0.015625, %v1016_v61  ;;  %1656 = vrsqrt.f32 %v1023_v47 }
 0x841   :  { %v1024_v3 = vadd.f32 1e-05, %v1020_v63 }
 0x843   :  { %1658 = vrsqrt.f32 %v1024_v3 }
 0x845   :  { %v1653_v4 = vpop.eup %1652 }
 0x846   :  { %v1029_v7 = vmul.f32 %v1653_v4, %v2215_v37 }
 0x847   :  { %v1655_v5 = vpop.eup %1654 }
 0x848   :  { %v1030_v8 = vmul.f32 %v1655_v5, %v2218_v46 }
 0x849   :  { %v1657_v11 = vpop.eup %1656 }
 0x84a   :  { %v1033_v10 = vpack.c.bf16 %v1030_v8, %v1029_v7  ;;  %v1031_v16 = vmul.f32 %v1657_v11, %v2212_v26 }
 0x84c   :  { %1370 = vmatmul.mubr.msk.bf16.vlgmr.msra.gmra.mrb[16].mxu0 %vm110_vm0, %v1033_v10 }
 0x84d   :  { %v1659_v12 = vpop.eup %1658  ;;  %1131 = vmatprep.mubr.bf16.mxu0 %v1825_v21  ;;  %v1590_v21 = vld [vmem:[%s2317_s4 + $0x10] sm:$0xff]   ;;  %s1827_s4 = smov [#allocation11]  }
 0x84e   :  { %v1032_v14 = vmul.f32 %v1659_v12, %v2223_v49  ;;  %1498 = vmatprep.subr.bf16.mxu1 %v1590_v21  ;;  %s1302_s28 = sshll.u32 %s1827_s4, 4  ;;  %s1303_s28 = int_to_ptr.vmem [resolvable:$true] %s1302_s28 }
 0x84f   :  { %1499 = vmatpush3.bf16.msra.mxu1 %v1590_v21  ;;  %s1786_s5 = scalar_lea.vmem %s1303_s28, 512  ;;  %p1791_p13 = scmp.lt.s32.totalorder %s1303_s28, %s1303_s28 }
 0x850   :  { %v1034_v17 = vpack.c.bf16 %v1032_v14, %v1031_v16  ;;  %1500 = vmatprep.subr.bf16.mxu1 %v1591_v20  ;;  %p1787_p12 = scmp.ne.s32.totalorder %s1303_s28, %s1786_s5  ;;  %p1792_p0 = scmp.lt.s32.totalorder %s1786_s5, %s1786_s5 }
 0x852   :  { %p1793_p1 = por %p1792_p0, %p1791_p13 }
 0x853   :  { %1501 = vmatpush3.bf16.msra.mxu1 %v1591_v20 }
 0x854   :  { %1371 = vmatmul.mubr.msk.bf16.gmra.mrb[20].mxu0 %vm110_vm0, %v1034_v17  ;;  %1502 = vmatprep.subr.bf16.mxu1 %v1592_v23  ;;  %p1794_p2 = pnand %p1793_p1, %p1787_p12 }
 0x857   :  { %1503 = vmatpush3.bf16.msra.mxu1 %v1592_v23 }
 0x858   :  { %1504 = vmatprep.subr.bf16.mxu1 %v1593_v24 }
 0x85b   :  { %1505 = vmatpush3.bf16.msra.mxu1 %v1593_v24 }
 0x85c   :  { %1506 = vmatprep.subr.bf16.mxu1 %v1594_v27 }
 0x85f   :  { %1507 = vmatpush3.bf16.msra.mxu1 %v1594_v27 }
 0x860   :  { %1508 = vmatprep.subr.bf16.mxu1 %v1595_v33 }
 0x863   :  { %1509 = vmatpush3.bf16.msra.mxu1 %v1595_v33 }
 0x91f   :  { %v1123_v25 = vpop.f32.mrb[16].mxu0 }
 0x920   :  { %v1125_v34 = vpop.f32.mrb[17].mxu0 }
 0x921   :  { %v1372_v35 = vmul.f32 -1.442695, %v1125_v34  ;;  %v1127_v29 = vpop.f32.mrb[18].mxu0 }
 0x922   :  { %v1129_v38 = vpop.f32.mrb[19].mxu0 }
 0x923   :  { %1660 = vpow2.f32 %v1372_v35  ;;  %v1373_v15 = vmul.f32 -1.442695, %v1129_v38 }
 0x925   :  { %1662 = vpow2.f32 %v1373_v15 }
 0x927   :  { %v1133_v13 = vpop.f32.mrb[20].mxu0 }
 0x928   :  { %v1135_v40 = vpop.f32.mrb[21].mxu0 }
 0x929   :  { %v1374_v62 = vmul.f32 -1.442695, %v1135_v40  ;;  %v1137_v9 = vpop.f32.mrb[22].mxu0 }
 0x92a   :  { %v1139_v41 = vpop.f32.mrb[23].mxu0 }
 0x92b   :  { %1664 = vpow2.f32 %v1374_v62  ;;  %v1375_v42 = vmul.f32 -1.442695, %v1139_v41 }
 0x92d   :  { %v1661_v44 = vpop.eup %1660  ;;  %1666 = vpow2.f32 %v1375_v42 }
 0x92e   :  { %v1154_v22 = vadd.f32 1.0, %v1661_v44 }
 0x92f   :  { %v1663_v28 = vpop.eup %1662 }
 0x930   :  { %1668 = vrcp.f32 %v1154_v22  ;;  %v1155_v31 = vadd.f32 1.0, %v1663_v28 }
 0x932   :  { %1670 = vrcp.f32 %v1155_v31 }
 0x935   :  { %v1665_v0 = vpop.eup %1664 }
 0x936   :  { %v1156_v1 = vadd.f32 1.0, %v1665_v0 }
 0x937   :  { %v1667_v50 = vpop.eup %1666 }
 0x938   :  { %1672 = vrcp.f32 %v1156_v1  ;;  %v1157_v6 = vadd.f32 1.0, %v1667_v50 }
 0x93a   :  { %v1669_v51 = vpop.eup %1668  ;;  %1674 = vrcp.f32 %v1157_v6 }
 0x93b   :  { %v1166_v2 = vmul.f32 %v1669_v51, %v1125_v34 }
 0x93c   :  { %v1671_v52 = vpop.eup %1670 }
 0x93d   :  { %v1170_v53 = vmul.f32 %v1166_v2, %v1123_v25  ;;  %v1167_v54 = vmul.f32 %v1671_v52, %v1129_v38 }
 0x93f   :  { %v1171_v55 = vmul.f32 %v1167_v54, %v1127_v29 }
 0x941   :  { %v1174_v56 = vpack.c.bf16 %v1171_v55, %v1170_v53 }
 0x942   :  { %v1673_v57 = vpop.eup %1672 }
 0x943   :  { %v1168_v43 = vmul.f32 %v1673_v57, %v1135_v40  ;;  %1510 = vmatprep.mubr.bf16.mxu1 %v1174_v56 }
 0x944   :  { %v1675_v45 = vpop.eup %1674 }
 0x945   :  { %v1172_v58 = vmul.f32 %v1168_v43, %v1133_v13  ;;  %v1169_v59 = vmul.f32 %v1675_v45, %v1139_v41 }
 0x947   :  { %v1173_v30 = vmul.f32 %v1169_v59, %v1137_v9 }
 0x949   :  { %v1175_v32 = vpack.c.bf16 %v1173_v30, %v1172_v58 }
 0x94b   :  { %1511 = vmatmul.mubr.bf16.vlgmr.msra.gmra.mrb[16].mxu1 %v1175_v32 }
 0xa1e   :  { %v1512_v60 = vpop.f32.mrb[16].mxu1 }
 0xa1f   :  { %v1291_v36 = vadd.f32 %v1512_v60, %v2212_v26  ;;  %v1274_v48 = vpop.f32.mrb[17].mxu1 }
 0xa20   :  { %v1289_v39 = vadd.f32 %v1274_v48, %v2215_v37  ;;  %v1513_v47 = vpop.f32.mrb[18].mxu1 }
 0xa21   :  { %1295 = vst.msk [vmem:[#allocation11 + $0x10] sm:$0xff] %vm110_vm0, %v1291_v36  ;;  %v1292_v61 = vadd.f32 %v1513_v47, %v2223_v49  ;;  %v1277_v63 = vpop.f32.mrb[19].mxu1 }
 0xa22   :  { %1293 = vst.msk [vmem:[#allocation11] sm:$0xff] %vm110_vm0, %v1289_v39  ;;  %v1290_v3 = vadd.f32 %v1277_v63, %v2218_v46 }
 0xa23   :  { %1296 = vst.msk [vmem:[#allocation11 + $0x18] sm:$0xff] %vm110_vm0, %v1292_v61 }
 0xa24   :  { %1294 = vst.msk [vmem:[#allocation11 + $0x8] sm:$0xff] %vm110_vm0, %v1290_v3 }
 0xa25   :  { %1797 = shalt.err (!%p1794_p2)
}
 0xa26   :  { %s1798_s1 = scalar_lea.hbm %s2322_s9, 512 }
 0xa27   :  { %p1799_p3 = scmp.ne.s32.totalorder %s2322_s9, %s1798_s1  ;;  %p1802_p4 = scmp.lt.u32.totalorder %s1798_s1, %s2322_s9 }
 0xa29   :  { %p1804_p5 = pnand %p1802_p4, %p1799_p3 }
 0xa2b   :  { %1807 = shalt.err (!%p1804_p5)
}
 0xa2c   :  { %1308 = dma.vmem_to_hbm [thread:$0]  %s1303_s28, 512, %s2322_s9, [#allocation4], %s1821_s10, %s1821_s10, %s1822_s14  }
 0xa2d   :  { %1814 = dma.done.wait [#allocation4], 512  }
 0xa2e   :  { %1815 = vsyncadd [#allocation4], 4294966784 }
 0xa2f   :  { %1312 = vsyncpa [#allocation3], 1 }
 0xa30   :  { %1313 = vsyncpa [#allocation6], 1 }
 0xa31   :  { %1314 = vsyncpa [#allocation9], 1 }
 0xa32   :  { %1315 = vsyncpa [#allocation4], 1 }

</bundles_post_ra>
